<compile_context>
chip_gen: v5e
topology: v5e:2x2
jax: 0.10.0
libtpu: 0.0.40
codegen_flags: <defaults>
</compile_context>

<pallas_src>
import jax
import jax.numpy as jnp
from jax import lax
from jax.experimental import pallas as pl
from jax.experimental.pallas import tpu as pltpu

LANES = 128
SUBLANES = 8
SUB_ROWS = 1024          # inner sub-slice: bounds f32 temporaries to ~512 KiB


def _chip_kind() -> str:
    try:
        return jax.devices()[0].device_kind.lower().replace(" ", "")
    except Exception:  # pragma: no cover - be robust off-TPU
        return ""


def _make_kernel(tile_rows: int, sub_rows: int, rows_total: int,
                 n_chunks: int, chunks_per_part: int,
                 needs_row_mask: bool, has_dups: bool):
    n_sub = tile_rows // sub_rows
    # Chunks strictly below `last_full` are guaranteed full (no masking).
    last_full = n_chunks - 1 if needs_row_mask else n_chunks

    def kernel(x_ref, y_ref, o_ref, acc_ref):
        p = pl.program_id(0)
        i = pl.program_id(1)
        # Un-clamped chunk id (the index_map clamps the *block* index; row
        # offsets for the tail mask must use the un-clamped id).
        chunk = p * chunks_per_part + i

        @pl.when(i == 0)
        def _():
            acc_ref[...] = jnp.zeros_like(acc_ref)

        def tile_partial(xs, ys, row0, mask_rows):
            # Cast in-kernel: HBM traffic stays at the input dtype's width.
            xs = xs.astype(jnp.float32)
            ys = ys.astype(jnp.float32)
            d = xs - ys
            sq = d * d
            if mask_rows:
                nrows = xs.shape[0]
                row_ids = (chunk * tile_rows + row0
                           + lax.broadcasted_iota(jnp.int32, (nrows, LANES), 0))
                sq = jnp.where(row_ids < rows_total, sq, 0.0)
            f = xs.shape[0] // SUBLANES
            if f == 1:
                return sq
            # Fold onto an (8,128) vreg-shaped partial: pure VPU adds.
            return jnp.sum(sq.reshape(f, SUBLANES, LANES), axis=0)

        def accumulate(mask_rows):
            if n_sub == 1:
                acc_ref[...] += tile_partial(x_ref[...], y_ref[...], 0,
                                             mask_rows)
            else:
                def body(s, carry):
                    r0 = pl.multiple_of(s * sub_rows, sub_rows)
                    return carry + tile_partial(
                        x_ref[pl.ds(r0, sub_rows), :],
                        y_ref[pl.ds(r0, sub_rows), :],
                        r0, mask_rows)
                part = lax.fori_loop(
                    0, n_sub, body,
                    jnp.zeros((SUBLANES, LANES), jnp.float32),
                    unroll=True)
                acc_ref[...] += part

        if needs_row_mask or has_dups:
            # Interior chunks: no mask, no extra VALU work.
            @pl.when(chunk < last_full)
            def _():
                accumulate(mask_rows=False)

            if needs_row_mask:
                # Exactly the one partial tail chunk pays for the row mask.
                @pl.when(chunk == n_chunks - 1)
                def _():
                    accumulate(mask_rows=True)
            # Clamped duplicate chunks (chunk >= n_chunks) skip accumulation.
        else:
            accumulate(mask_rows=False)

        # Single cross-lane/sublane reduction, once per partial.
        @pl.when(i == pl.num_programs(1) - 1)
        def _():
            o_ref[0, 0] = jnp.sum(acc_ref[...])

    return kernel


def adversarial_loss(x: jax.Array, y: jax.Array) -> jax.Array:
    """0.5 * mean((x - y)**2), computed in a Pallas TPU kernel."""
    assert x.shape == y.shape, "x and y must have the same shape"
    n = x.size

    if n < SUBLANES * LANES:
        # Tiny inputs: kernel-launch overhead dominates; plain JAX is faster.
        d = x.astype(jnp.float32) - y.astype(jnp.float32)
        return 0.5 * jnp.mean(d * d)

    kind = _chip_kind()
    # Dual-TensorCore chips (v7x): 2 partials so both TCs stream HBM.
    # Single-TC chips (v5e/v6e): 1 partial (leading axis would just be a
    # serial loop + wasted duplicate block).
    # TODO(synk): if xprof shows only one TC streaming on v7x, switch the
    # first dimension_semantics entry to pltpu.CORE_PARALLEL.
    num_partials = 2 if "v7" in kind else 1
    # ~4 MiB per input block on v6e/v7x, ~2 MiB on v5e (smaller scoped VMEM
    # and slower HBM already amortizes the per-step cost).
    is_v5e = ("v5e" in kind) or ("v5lite" in kind)
    target_bytes = (2 << 20) if is_v5e else (4 << 20)

    xf = x.reshape(-1)
    yf = y.reshape(-1)
    # Pad only when needed so the flat length is a multiple of 8*128
    # (zero diffs contribute nothing to the sum).
    pad = (-n) % (SUBLANES * LANES)
    if pad:
        xf = jnp.pad(xf, (0, pad))
        yf = jnp.pad(yf, (0, pad))
    rows = (n + pad) // LANES                 # multiple of 8

    x2d = xf.reshape(rows, LANES)
    y2d = yf.reshape(rows, LANES)

    # Dtype-scaled tile: keeps bytes-per-DMA-step constant (bigger row count
    # for bf16/fp16 inputs streamed in native width).
    itemsize = max(jnp.dtype(x.dtype).itemsize, jnp.dtype(y.dtype).itemsize)
    target_rows = max(SUBLANES, target_bytes // (LANES * itemsize))

    sub_rows = min(SUB_ROWS, rows)            # multiple of 8
    tile_rows = min(target_rows, rows)
    tile_rows = max(sub_rows, (tile_rows // sub_rows) * sub_rows)

    n_chunks = pl.cdiv(rows, tile_rows)
    chunks_per_part = pl.cdiv(n_chunks, num_partials)
    needs_row_mask = (rows % tile_rows) != 0
    has_dups = (num_partials * chunks_per_part) != n_chunks
    last_block = n_chunks - 1

    if has_dups:
        # Clamp out-of-range chunks onto the last valid block; their
        # contribution is skipped in-kernel.
        def in_map(p, i):
            return (jnp.minimum(p * chunks_per_part + i, last_block), 0)
    else:
        def in_map(p, i):
            return (p * chunks_per_part + i, 0)

    kernel = _make_kernel(tile_rows, sub_rows, rows, n_chunks,
                          chunks_per_part, needs_row_mask, has_dups)

    cost = pl.CostEstimate(
        flops=3 * n,
        transcendentals=0,
        bytes_accessed=(xf.size * jnp.dtype(x.dtype).itemsize
                        + yf.size * jnp.dtype(y.dtype).itemsize
                        + 4 * num_partials),
    )

    partials = pl.pallas_call(
        kernel,
        out_shape=jax.ShapeDtypeStruct((num_partials, 1), jnp.float32),
        grid_spec=pltpu.PrefetchScalarGridSpec(
            num_scalar_prefetch=0,
            grid=(num_partials, chunks_per_part),
            in_specs=[
                pl.BlockSpec((tile_rows, LANES), in_map),
                pl.BlockSpec((tile_rows, LANES), in_map),
            ],
            out_specs=pl.BlockSpec((1, 1), lambda p, i: (p, 0),
                                   memory_space=pltpu.SMEM),
            scratch_shapes=[pltpu.VMEM((SUBLANES, LANES), jnp.float32)],
        ),
        compiler_params=pltpu.CompilerParams(
            dimension_semantics=("parallel", "arbitrary"),
            vmem_limit_bytes=40 * 1024 * 1024),
        cost_estimate=cost,
    )(x2d, y2d)

    return 0.5 * jnp.sum(partials) / jnp.float32(n)


if __name__ == "__main__":
    key = jax.random.PRNGKey(0)
    kx, ky = jax.random.split(key)

    # Typical GAN discriminator-output-like tensors, NCHW.
    x = jax.random.normal(kx, (2, 4, 16, 16), dtype=jnp.float32)
    y = jax.random.normal(ky, (2, 4, 16, 16), dtype=jnp.float32)

    loss = adversarial_loss(x, y)
    jax.block_until_ready(loss)
    ref = 0.5 * jnp.mean((x - y) ** 2)
    assert jnp.allclose(loss, ref, rtol=1e-4, atol=1e-6), (loss, ref)

    # Second check that exercises multi-chunk tiling + the gated tail mask
    # (rows > SUB_ROWS and not a multiple of it).
    kx2, ky2 = jax.random.split(jax.random.PRNGKey(1))
    x2 = jax.random.normal(kx2, (1, 1, 1100, 128), dtype=jnp.float32)
    y2 = jax.random.normal(ky2, (1, 1, 1100, 128), dtype=jnp.float32)
    loss2 = adversarial_loss(x2, y2)
    jax.block_until_ready(loss2)
    ref2 = 0.5 * jnp.mean((x2 - y2) ** 2)
    assert jnp.allclose(loss2, ref2, rtol=1e-4, atol=1e-6), (loss2, ref2)

    print("KERNEL_OK")
</pallas_src>

<mosaic_0001>
module attributes {stable_mosaic.version = 11 : i64} {
  func.func @kernel(%arg0: i32, %arg1: i32, %arg2: memref<16x128xf32, #tpu.memory_space<vmem>>, %arg3: memref<16x128xf32, #tpu.memory_space<vmem>>, %arg4: memref<1x1xf32, #tpu.memory_space<smem>>, %arg5: memref<8x128xf32, #tpu.memory_space<vmem>>) attributes {dimension_semantics = [#tpu.dimension_semantics<parallel>, #tpu.dimension_semantics<arbitrary>], iteration_bounds = array<i64: 1, 1>, scalar_prefetch = 0 : i64, scratch_operands = 1 : i64, tpu.core_type = #tpu.core_type<tc>, window_params = [{transform_indices = @transform_0, window_bounds = array<i64: 16, 128>}, {transform_indices = @transform_1, window_bounds = array<i64: 16, 128>}, {transform_indices = @transform_2, window_bounds = array<i64: 1, 1>}]} {
    %c0_i32 = arith.constant 0 : i32
    %0 = arith.cmpi eq, %arg1, %c0_i32 : i32
    %1 = arith.extui %0 : i1 to i32
    %c0_i32_0 = arith.constant 0 : i32
    %2 = arith.cmpi ne, %1, %c0_i32_0 : i32
    scf.if %2 {
      %cst_10 = arith.constant 0.000000e+00 : f32
      %15 = vector.broadcast %cst_10 : f32 to vector<8x128xf32>
      %c0_11 = arith.constant 0 : index
      %c0_12 = arith.constant 0 : index
      %16 = vector.load %arg5[%c0_11, %c0_12] : memref<8x128xf32, #tpu.memory_space<vmem>>, vector<8x128xf32>
      tpu.vector_store %arg5[%c0_11, %c0_12], %15 {strides = array<i32>} : memref<8x128xf32, #tpu.memory_space<vmem>>, vector<8x128xf32>,
    } else {
    }
    %c0 = arith.constant 0 : index
    %c0_1 = arith.constant 0 : index
    %3 = vector.load %arg5[%c0, %c0_1] : memref<8x128xf32, #tpu.memory_space<vmem>>, vector<8x128xf32>
    %c0_2 = arith.constant 0 : index
    %c0_3 = arith.constant 0 : index
    %4 = vector.load %arg2[%c0_2, %c0_3] : memref<16x128xf32, #tpu.memory_space<vmem>>, vector<16x128xf32>
    %c0_4 = arith.constant 0 : index
    %c0_5 = arith.constant 0 : index
    %5 = vector.load %arg3[%c0_4, %c0_5] : memref<16x128xf32, #tpu.memory_space<vmem>>, vector<16x128xf32>
    %6 = arith.subf %4, %5 : vector<16x128xf32>
    %7 = arith.mulf %6, %6 : vector<16x128xf32>
    %8 = vector.shape_cast %7 : vector<16x128xf32> to vector<2x8x128xf32>
    %cst = arith.constant dense<0.000000e+00> : vector<8x128xf32>
    %9 = vector.multi_reduction <add>, %8, %cst [0] : vector<2x8x128xf32> to vector<8x128xf32>
    %10 = arith.addf %3, %9 : vector<8x128xf32>
    %c0_6 = arith.constant 0 : index
    %c0_7 = arith.constant 0 : index
    %11 = vector.load %arg5[%c0_6, %c0_7] : memref<8x128xf32, #tpu.memory_space<vmem>>, vector<8x128xf32>
    tpu.vector_store %arg5[%c0_6, %c0_7], %10 {strides = array<i32>} : memref<8x128xf32, #tpu.memory_space<vmem>>, vector<8x128xf32>,
    %c0_i32_8 = arith.constant 0 : i32
    %12 = arith.cmpi eq, %arg1, %c0_i32_8 : i32
    %13 = arith.extui %12 : i1 to i32
    %c0_i32_9 = arith.constant 0 : i32
    %14 = arith.cmpi ne, %13, %c0_i32_9 : i32
    scf.if %14 {
      %c0_10 = arith.constant 0 : index
      %c0_11 = arith.constant 0 : index
      %15 = vector.load %arg5[%c0_10, %c0_11] : memref<8x128xf32, #tpu.memory_space<vmem>>, vector<8x128xf32>
      %16 = vector.shape_cast %15 : vector<8x128xf32> to vector<1x8x128xf32>
      %cst_12 = arith.constant dense<0.000000e+00> : vector<1xf32>
      %17 = vector.multi_reduction <add>, %16, %cst_12 [1, 2] : vector<1x8x128xf32> to vector<1xf32>
      %18 = vector.shape_cast %17 : vector<1xf32> to vector<1x1x1xf32>
      %19 = vector.extract %18[0, 0, 0] : f32 from vector<1x1x1xf32>
      %c0_13 = arith.constant 0 : index
      %c0_14 = arith.constant 0 : index
      %20 = memref.load %arg4[%c0_13, %c0_14] : memref<1x1xf32, #tpu.memory_space<smem>>
      memref.store %19, %arg4[%c0_13, %c0_14] : memref<1x1xf32, #tpu.memory_space<smem>>
    } else {
    }
    return
  }
  func.func @transform_0(%arg0: i32, %arg1: i32) -> (i32, i32) {
    %c1_i32 = arith.constant 1 : i32
    %0 = arith.muli %arg0, %c1_i32 : i32
    %1 = arith.addi %0, %arg1 : i32
    %c0_i32 = arith.constant 0 : i32
    %c0_i32_0 = arith.constant 0 : i32
    return %1, %c0_i32 : i32, i32
  }
  func.func @transform_1(%arg0: i32, %arg1: i32) -> (i32, i32) {
    %c1_i32 = arith.constant 1 : i32
    %0 = arith.muli %arg0, %c1_i32 : i32
    %1 = arith.addi %0, %arg1 : i32
    %c0_i32 = arith.constant 0 : i32
    %c0_i32_0 = arith.constant 0 : i32
    return %1, %c0_i32 : i32, i32
  }
  func.func @transform_2(%arg0: i32, %arg1: i32) -> (i32, i32) {
    %c0_i32 = arith.constant 0 : i32
    %c0_i32_0 = arith.constant 0 : i32
    return %arg0, %c0_i32 : i32, i32
  }
}

</mosaic_0001>

<bundles_post_ra>
// kernel: tpu_custom_call.1
= control target key start
LH: loop header
LB: loop body
LE: loop exit
PB: predicated region body
PF: predicated region fallthrough
CT: control target
= control target key end

     0   :  { %7 = vsyncpa [#allocation4], 0  ;;  %s207_s0 = inlined_call_operand.hbm [shape: f32[16,128], index: 0, kind: input, shape index: {}]   ;;  %s208_s1 = inlined_call_operand.hbm [shape: f32[16,128], index: 1, kind: input, shape index: {}]   ;;  %s209_s2 = inlined_call_operand.hbm [shape: f32[1,1], index: 2, kind: output, shape index: {}]  }
   0x1   :  { %8 = vsyncpa [#allocation7], 0 }
   0x2   :  { %9 = vsyncpa [#allocation5], 0  ;;  %s18_s11 = sshll.u32 %s207_s0, 4  ;;  %s178_s12 = smov [#allocation3]   ;;  %s19_s11 = int_to_ptr.hbm [resolvable:$true] %s18_s11 }
   0x3   :  { %s20_s13 = sshll.u32 %s178_s12, 4  ;;  %s35_s16 = sshll.u32 %s208_s1, 4  ;;  %s21_s13 = int_to_ptr.vmem [resolvable:$true] %s20_s13  ;;  %s36_s16 = int_to_ptr.hbm [resolvable:$true] %s35_s16 }
   0x4   :  { %s179_s17 = smov 128   ;;  %s180_s18 = smov 8  }
   0x5   :  { %26 = dma.hbm_to_vmem [thread:$0]  %s19_s11, 256, %s21_s13, [#allocation4], %s179_s17, %s179_s17, %s180_s18  }
   0x6   :  { %s181_s19 = smov [#allocation6]  }
   0x7   :  { %s37_s20 = sshll.u32 %s181_s19, 4  ;;  %s38_s20 = int_to_ptr.vmem [resolvable:$true] %s37_s20 }
   0x8   :  { %43 = dma.hbm_to_vmem [thread:$0]  %s36_s16, 256, %s38_s20, [#allocation7], %s179_s17, %s179_s17, %s180_s18  }
   0x9   :  { %172 = dma.done.wait [#allocation4], 256  }
   0xa   :  { %173 = vsyncadd [#allocation4], 4294967040 }
   0xb   :  { %174 = dma.done.wait [#allocation7], 256  }
   0xc   :  { %175 = vsyncadd [#allocation7], 4294967040  ;;  %v62_v0 = vld [vmem:[#allocation3] sm:$0xff]  ;;  %v63_v1 = vld [vmem:[#allocation3 + $0x8] sm:$0xff]  ;;  %s93_s21 = sshll.u32 %s209_s2, 4  ;;  %s182_s23 = smov [#allocation8]   ;;  %s94_s21 = int_to_ptr.hbm [resolvable:$true] %s93_s21 }
   0xd   :  { %v64_v2 = vld [vmem:[#allocation6] sm:$0xff]  ;;  %v65_v3 = vld [vmem:[#allocation6 + $0x8] sm:$0xff] }
   0xe   :  { %v66_v4 = vsub.f32 %v62_v0, %v64_v2  ;;  %v67_v5 = vsub.f32 %v63_v1, %v65_v3 }
  0x10   :  { %v68_v6 = vmul.f32 %v66_v4, %v66_v4  ;;  %v69_v7 = vmul.f32 %v67_v5, %v67_v5 }
  0x12   :  { %v70_v8 = vadd.f32 %v69_v7, %v68_v6 }
  0x14   :  { %77 = vadd.xlane.f32.xlu0 %v70_v8 }
  0x87   :  { %v78_v9 = vpop.xlane.xlu0 %77 }
  0x88   :  { %v79_v10 = vrot.slane %v78_v9, 4 }
  0x8a   :  { %v80_v11 = vadd.f32 %v79_v10, %v78_v9 }
  0x8c   :  { %v81_v12 = vrot.slane %v80_v11, 2 }
  0x8e   :  { %v82_v13 = vadd.f32 %v81_v12, %v80_v11 }
  0x90   :  { %v83_v14 = vrot.slane %v82_v13, 1 }
  0x92   :  { %v84_v15 = vadd.f32 %v83_v14, %v82_v13 }
  0x94   :  { %105 = vpush %v84_v15 }
  0xc5   :  { %s106_s22 = spop %105 }
  0xc6   :  { %87 = sst [smem:[#allocation8]] %s106_s22 }
  0xc7   :  { %96 = dma.smem_to_hbm %s182_s23, 16, %s94_s21, [#allocation5]  }
  0xc8   :  { %176 = dma.done.wait [#allocation5], 16  }
  0xc9   :  { %177 = vsyncadd [#allocation5], 4294967280 }
  0xca   :  { %101 = sfence }
  0xcb   :  { %102 = vsyncpa [#allocation4], 1 }
  0xcc   :  { %103 = vsyncpa [#allocation7], 1 }
  0xcd   :  { %104 = vsyncpa [#allocation5], 1 }

</bundles_post_ra>
